<compile_context>
chip_gen: v7x
topology: tpu7x:2x2x1
jax: 0.10.0
libtpu: 0.0.40
codegen_flags: <defaults>
</compile_context>

<pallas_src>
import math

import numpy as np
import jax
import jax.numpy as jnp
from jax.experimental import pallas as pl
from jax.experimental.pallas import tpu as pltpu

# ----------------------------------------------------------------------------
# Hyper-parameters (mirroring GCRNII.__init__ / chosen config)
# ----------------------------------------------------------------------------
NUM_LAYERS = 3          # num_layers
ALPHA = 0.1             # GCN2Conv alpha
THETA = 0.5             # GCN2Conv theta
ACTIVATION = "relu"
DROPOUT = 0.0           # F.dropout(p=0.0) is the identity -> omitted in kernel
BN_EPS = 1e-5

# TODO(synk): dropout with p>0 (stochastic masking) is not implemented; the
# module default (0.0) makes it the identity.
# TODO(synk): BatchNorm uses training-mode batch statistics (eps=1e-5);
# eval-mode running statistics are not modelled.
# TODO(synk): for very large graphs (N >~ 4000 even with the bf16 adjacency)
# the full-graph NxN adjacency block should be node-row-tiled with a second
# grid axis / emit_pipeline and a cross-tile BatchNorm reduction; at
# realistic-but-moderate N the single-block kernel is simpler and faster.
# NOTE: bf16 adjacency storage is exact only while per-pair edge multiplicity
# stays <= 256 (integer-exact range of bf16).


def _pick_vmem_limit_bytes():
    """Generation-aware VMEM request: leave headroom on v7x (64 MiB physical
    per TensorCore), use the larger VMEM on v5e/v6e (128 MiB physical)."""
    try:
        cap = pltpu.get_tpu_info().vmem_capacity_bytes
    except Exception:  # noqa: BLE001 - fall back to the safest limit
        cap = 64 * 1024 * 1024
    return max(48 * 1024 * 1024, min(int(cap * 3 // 4), 100 * 1024 * 1024))


_VMEM_LIMIT = _pick_vmem_limit_bytes()


# ----------------------------------------------------------------------------
# Kernel 1: one temporal step of the GCNII stack
#   z   = D^-1/2 (A+I) D^-1/2 (x @ W_lin) + b_lin         (GCNConv, normalize)
#   for i in range(L-1):
#     h   = A_raw @ z                                     (GCN2Conv, normalize=False)
#     out = (1-alpha)*h + alpha*x0
#     z   = (1-beta_i)*out + beta_i*(out @ W_i)           (shared_weights=True)
#     [BatchNorm1d (batch stats) + ReLU for all but the last layer]
# The time axis is the grid axis and is fully independent -> "parallel"
# (megacore sharding on v7x when t_eff >= 2, free elsewhere). The adjacency
# stays bf16 end-to-end; only the (N,H) operands are cast, and accumulation is
# f32 via preferred_element_type.
# ----------------------------------------------------------------------------
def _gcn_step_kernel(a_raw_ref, d_ref, xw_ref, b_lin_ref,
                     w2_ref, bn_g_ref, bn_b_ref, z_out_ref):
    a_raw = a_raw_ref[...]                     # (N, N) bf16 edge counts
    d = d_ref[...]                             # (N, 1) = deg(A+I)^-1/2, f32
    xw = xw_ref[...]                           # (N, H) = x @ W_lin, f32

    # GCNConv: z = D^-1/2 (A+I) D^-1/2 (x@W) + b  =  d*(A_raw@(d*xw) + d*xw) + b
    xs = d * xw
    z = d * (jnp.dot(a_raw, xs.astype(jnp.bfloat16),
                     preferred_element_type=jnp.float32) + xs) + b_lin_ref[...]
    x0 = z
    if NUM_LAYERS == 2:
        z = jnp.maximum(z, 0.0)

    inv_n = 1.0 / z.shape[0]
    for i in range(NUM_LAYERS - 1):
        beta = math.log(THETA / (i + 1) + 1.0)   # GCN2Conv beta (static)
        h = jnp.dot(a_raw, z.astype(jnp.bfloat16),
                    preferred_element_type=jnp.float32)
        out = (1.0 - ALPHA) * h + ALPHA * x0
        z = (1.0 - beta) * out + beta * jnp.dot(
            out, w2_ref[i], preferred_element_type=jnp.float32)
        if i < NUM_LAYERS - 2:
            # BatchNorm1d over nodes, shifted two-pass variance
            mean = jnp.sum(z, axis=0, keepdims=True) * inv_n
            zc = z - mean
            var = jnp.sum(zc * zc, axis=0, keepdims=True) * inv_n
            gamma = bn_g_ref[...][i:i + 1, :]
            beta_bn = bn_b_ref[...][i:i + 1, :]
            z = zc * jax.lax.rsqrt(var + BN_EPS) * gamma + beta_bn
            if ACTIVATION == "relu":
                z = jnp.maximum(z, 0.0)
            elif ACTIVATION == "leaky_relu":
                z = jnp.where(z > 0, z, 0.01 * z)
            elif ACTIVATION == "tanh":
                z = jnp.tanh(z)

    z_out_ref[...] = z.astype(z_out_ref.dtype)   # bf16 handoff to the LSTM


def gcn_stack(a_raw_seq, d_seq, xw_seq, b_lin, w2_seq, bn_gamma, bn_beta):
    t_eff, n, _ = a_raw_seq.shape
    h = xw_seq.shape[-1]
    l1 = NUM_LAYERS - 1
    l2 = max(NUM_LAYERS - 2, 1)
    return pl.pallas_call(
        _gcn_step_kernel,
        out_shape=jax.ShapeDtypeStruct((t_eff, n, h), jnp.bfloat16),
        grid_spec=pltpu.PrefetchScalarGridSpec(
            num_scalar_prefetch=0,
            grid=(t_eff,),
            in_specs=[
                # adjacency stays bf16 in HBM and VMEM; on v6e with VMEM
                # headroom pipeline_mode=pl.Buffered(3) here can hide the N^2
                # DMA further (left at the default 2 to keep v7x viable).
                pl.BlockSpec((None, n, n), lambda t: (t, 0, 0)),       # A_raw (bf16)
                pl.BlockSpec((None, n, 1), lambda t: (t, 0, 0)),       # d^-1/2
                pl.BlockSpec((None, n, h), lambda t: (t, 0, 0)),       # x_t @ W_lin
                pl.BlockSpec((1, h), lambda t: (0, 0)),                # b_lin
                # the torch module has DISTINCT GCN2Conv / BatchNorm modules per
                # time step (convs indexed by t*(L-1)+i) -> per-t weight blocks
                pl.BlockSpec((None, l1, h, h), lambda t: (t, 0, 0, 0)),
                pl.BlockSpec((None, l2, h), lambda t: (t, 0, 0)),
                pl.BlockSpec((None, l2, h), lambda t: (t, 0, 0)),
            ],
            out_specs=pl.BlockSpec((None, n, h), lambda t: (t, 0, 0)),
        ),
        compiler_params=pltpu.CompilerParams(
            dimension_semantics=("parallel",),
            vmem_limit_bytes=_VMEM_LIMIT),
    )(a_raw_seq, d_seq, xw_seq, b_lin, w2_seq, bn_gamma, bn_beta)


# ----------------------------------------------------------------------------
# Kernel 2: single-layer LSTM over the sequence (batch = nodes) plus the
# future-prediction step: one extra LSTM cell with input=h_T, h0=0, c0=c_T.
# Gate order follows torch.nn.LSTM: (i, f, g, o), fused along the 4H lane axis.
# The input projection z @ W_ih + b is hoisted OUT of the recurrence into T
# independent bf16 matmuls (pipelined back-to-back on the MXU, overlapping the
# z DMA); the serial time loop only does h @ W_hh plus the gate nonlinearities.
# Grid is over node tiles (recurrence is only over time) -> pipelined and
# megacore-parallel, with per-tile h/c carried in registers (f32).
# ----------------------------------------------------------------------------
def _lstm_kernel(z_ref, w_ih_ref, w_hh_ref, b_ref, out_ref, fut_ref, gx_ref):
    w_ih = w_ih_ref[...].astype(jnp.bfloat16)   # (H, 4H)
    w_hh = w_hh_ref[...].astype(jnp.bfloat16)   # (H, 4H)
    b = b_ref[...]                              # (1, 4H)  (= b_ih + b_hh)
    hd = w_ih_ref.shape[0]
    n_steps = out_ref.shape[0]
    n_tile = out_ref.shape[1]

    # Hoisted input projection: off the serial critical path, bf16 MXU path,
    # f32 accumulate into VMEM scratch.
    for t in range(n_steps):
        gx_ref[t] = jnp.dot(z_ref[t], w_ih,
                            preferred_element_type=jnp.float32) + b

    def gates(g, c):
        i_g = jax.nn.sigmoid(g[:, 0 * hd:1 * hd])
        f_g = jax.nn.sigmoid(g[:, 1 * hd:2 * hd])
        g_g = jnp.tanh(g[:, 2 * hd:3 * hd])
        o_g = jax.nn.sigmoid(g[:, 3 * hd:4 * hd])
        c_new = f_g * c + i_g * g_g
        h_new = o_g * jnp.tanh(c_new)
        return h_new, c_new

    h0 = jnp.zeros((n_tile, hd), jnp.float32)
    c0 = jnp.zeros((n_tile, hd), jnp.float32)

    def body(t, carry):
        h, c = carry
        g = gx_ref[t] + jnp.dot(h.astype(jnp.bfloat16), w_hh,
                                preferred_element_type=jnp.float32)
        h_new, c_new = gates(g, c)
        out_ref[t] = h_new.astype(out_ref.dtype)
        return h_new, c_new

    # capped partial unroll: keeps LLO visibility without instruction blow-up
    h_t, c_t = jax.lax.fori_loop(0, n_steps, body, (h0, c0),
                                 unroll=min(n_steps, 8))

    # future prediction: input = h_T, hx = (0, c_T)  (h-term is zero)
    g_fut = jnp.dot(h_t.astype(jnp.bfloat16), w_ih,
                    preferred_element_type=jnp.float32) + b
    h_fut, _ = gates(g_fut, c_t)
    fut_ref[...] = h_fut.astype(fut_ref.dtype)


def lstm_seq(z_seq, w_ih, w_hh, b_lstm):
    t_eff, n, h = z_seq.shape
    # Node tile: aim for >=2 tiles (pipelining + v7x megacore) by targeting
    # ~n/2 rounded up to a multiple of 16 (bf16 sublane packing), capped at 256.
    # The node dim is padded to a multiple of the tile instead of silently
    # falling back to a single untiled block.
    n_half = (n + 1) // 2
    n_tile = min(256, max(16, ((n_half + 15) // 16) * 16))
    n_pad = pl.cdiv(n, n_tile) * n_tile
    if n_pad != n:
        z_seq = jnp.pad(z_seq, ((0, 0), (0, n_pad - n), (0, 0)))

    out, fut = pl.pallas_call(
        _lstm_kernel,
        out_shape=(jax.ShapeDtypeStruct((t_eff, n_pad, h), jnp.float32),
                   jax.ShapeDtypeStruct((n_pad, h), jnp.float32)),
        grid_spec=pltpu.PrefetchScalarGridSpec(
            num_scalar_prefetch=0,
            grid=(n_pad // n_tile,),
            in_specs=[
                pl.BlockSpec((t_eff, n_tile, h), lambda j: (0, j, 0)),  # z (bf16)
                pl.BlockSpec((h, 4 * h), lambda j: (0, 0)),             # W_ih
                pl.BlockSpec((h, 4 * h), lambda j: (0, 0)),             # W_hh
                pl.BlockSpec((1, 4 * h), lambda j: (0, 0)),             # b
            ],
            out_specs=(pl.BlockSpec((t_eff, n_tile, h), lambda j: (0, j, 0)),
                       pl.BlockSpec((n_tile, h), lambda j: (j, 0))),
            scratch_shapes=[pltpu.VMEM((t_eff, n_tile, 4 * h), jnp.float32)],
        ),
        compiler_params=pltpu.CompilerParams(
            dimension_semantics=("parallel",),
            vmem_limit_bytes=_VMEM_LIMIT),
    )(z_seq, w_ih, w_hh, b_lstm)

    if n_pad != n:
        out = out[:, :n]
        fut = fut[:n]
    return out, fut


# ----------------------------------------------------------------------------
# Plain-JAX glue: dense adjacency + GCNConv normalisation vector + tiny input
# projection (x @ W_lin with F_IN ~ 4 would be a lane-4 padded block in-kernel)
# ----------------------------------------------------------------------------
def build_adjacency(edge_index, num_nodes):
    """A_raw[dst, src] = edge multiplicity ; d = deg(A+I)^-1/2."""
    src, dst = edge_index[0], edge_index[1]
    a_raw = jnp.zeros((num_nodes, num_nodes), jnp.float32).at[dst, src].add(1.0)
    deg = jnp.sum(a_raw, axis=1) + 1.0          # in-degree of A+I, always >= 1
    d_inv_sqrt = jax.lax.rsqrt(deg)
    return a_raw, d_inv_sqrt[:, None]


def gcrnii_forward(x_seq, edge_index_seq, p):
    """Returns (z_lstm [T-1, N, H], z_future [N, H]); the torch module's output
    list is [z_lstm[0], ..., z_lstm[T-2], z_future]."""
    T, n, _ = x_seq.shape
    t_eff = T - 1  # future_prediction=True -> last time step is skipped
    a_raw, d = [], []
    for t in range(t_eff):
        ar, dv = build_adjacency(edge_index_seq[t], n)
        a_raw.append(ar)
        d.append(dv)
    # bf16 adjacency storage: values are small integer counts -> exact in bf16,
    # halves adjacency HBM traffic and keeps the MXU on its native bf16 path.
    a_raw = jnp.stack(a_raw).astype(jnp.bfloat16)
    d = jnp.stack(d)
    # tiny-F_IN projection done once in XLA (removes a K=F_IN matmul and a
    # lane-4 block from the kernel; the NxN adjacency work stays in Pallas).
    xw_seq = jnp.einsum('tnf,fh->tnh', x_seq[:t_eff], p["w_lin"])

    z_pre = gcn_stack(a_raw, d, xw_seq, p["b_lin"], p["w2"],
                      p["bn_g"], p["bn_b"])
    z_lstm, z_future = lstm_seq(z_pre, p["w_ih"], p["w_hh"], p["b_lstm"])
    return z_lstm, z_future


# ----------------------------------------------------------------------------
# Pure-JAX f32 reference (same math, no Pallas; builds the normalised adjacency
# explicitly by scatter, independently of the in-kernel d-formulation)
# ----------------------------------------------------------------------------
def reference_forward(x_seq_eff, edge_index_seq, p):
    t_eff, n, _ = x_seq_eff.shape
    z_pre = []
    for t in range(t_eff):
        src, dst = edge_index_seq[t][0], edge_index_seq[t][1]
        a_raw = jnp.zeros((n, n), jnp.float32).at[dst, src].add(1.0)
        loop = jnp.arange(n)
        src_sl = jnp.concatenate([src, loop])
        dst_sl = jnp.concatenate([dst, loop])
        deg = jnp.zeros((n,), jnp.float32).at[dst_sl].add(1.0)
        dis = jnp.where(deg > 0, jax.lax.rsqrt(deg), 0.0)
        norm = dis[src_sl] * dis[dst_sl]
        a_norm = jnp.zeros((n, n), jnp.float32).at[dst_sl, src_sl].add(norm)

        z = a_norm @ (x_seq_eff[t] @ p["w_lin"]) + p["b_lin"]
        x0 = z
        if NUM_LAYERS == 2:
            z = jnp.maximum(z, 0.0)
        for i in range(NUM_LAYERS - 1):
            beta = math.log(THETA / (i + 1) + 1.0)
            out = (1.0 - ALPHA) * (a_raw @ z) + ALPHA * x0
            z = (1.0 - beta) * out + beta * (out @ p["w2"][t, i])
            if i < NUM_LAYERS - 2:
                mean = z.mean(0, keepdims=True)
                var = ((z - mean) ** 2).mean(0, keepdims=True)
                z = (z - mean) * jax.lax.rsqrt(var + BN_EPS) * p["bn_g"][t, i] \
                    + p["bn_b"][t, i]
                z = jnp.maximum(z, 0.0)
        z_pre.append(z)
    z_pre = jnp.stack(z_pre)

    hd = z_pre.shape[-1]

    def cell(x, h, c):
        g = x @ p["w_ih"] + h @ p["w_hh"] + p["b_lstm"]
        i_g = jax.nn.sigmoid(g[:, 0 * hd:1 * hd])
        f_g = jax.nn.sigmoid(g[:, 1 * hd:2 * hd])
        g_g = jnp.tanh(g[:, 2 * hd:3 * hd])
        o_g = jax.nn.sigmoid(g[:, 3 * hd:4 * hd])
        c_n = f_g * c + i_g * g_g
        return o_g * jnp.tanh(c_n), c_n

    h = jnp.zeros((n, hd), jnp.float32)
    c = jnp.zeros((n, hd), jnp.float32)
    outs = []
    for t in range(t_eff):
        h, c = cell(z_pre[t], h, c)
        outs.append(h)
    fut, _ = cell(h, jnp.zeros_like(h), c)
    return jnp.stack(outs), fut


# ----------------------------------------------------------------------------
if __name__ == "__main__":
    key = jax.random.PRNGKey(0)
    # NOTE: H should be a multiple of 128 (ideally 256) in production for
    # lane-dense stores / full MXU columns; small demo shapes here.
    T, N, F_IN, H = 8, 24, 4, 32
    NUM_EDGES = 64
    T_EFF = T - 1
    L1 = NUM_LAYERS - 1
    L2 = max(NUM_LAYERS - 2, 1)

    keys = jax.random.split(key, 12)
    x_seq = jax.random.normal(keys[0], (T, N, F_IN), jnp.float32)
    src = jax.random.randint(keys[1], (T, NUM_EDGES), 0, N)
    dst = jax.random.randint(keys[2], (T, NUM_EDGES), 0, N)
    edge_index_seq = jnp.stack([src, dst], axis=1)   # [T, 2, num_edges]

    params = {
        "w_lin": 0.3 * jax.random.normal(keys[3], (F_IN, H), jnp.float32),
        "b_lin": 0.1 * jax.random.normal(keys[4], (1, H), jnp.float32),
        # distinct GCN2Conv / BatchNorm weights per time step (as in the torch
        # module, whose convs list is indexed by t*(L-1)+i)
        "w2": 0.2 * jax.random.normal(keys[5], (T_EFF, L1, H, H), jnp.float32),
        "bn_g": 1.0 + 0.1 * jax.random.normal(keys[6], (T_EFF, L2, H), jnp.float32),
        "bn_b": 0.1 * jax.random.normal(keys[7], (T_EFF, L2, H), jnp.float32),
        # fused LSTM weights, torch gate order (i, f, g, o) along the 4H axis
        "w_ih": 0.2 * jax.random.normal(keys[8], (H, 4 * H), jnp.float32),
        "w_hh": 0.2 * jax.random.normal(keys[9], (H, 4 * H), jnp.float32),
        "b_lstm": 0.1 * jax.random.normal(keys[10], (1, 4 * H), jnp.float32),
    }

    z_lstm, z_future = gcrnii_forward(x_seq, edge_index_seq, params)
    jax.block_until_ready((z_lstm, z_future))

    ref_lstm, ref_future = reference_forward(x_seq[:T_EFF], edge_index_seq, params)
    # slightly wider tolerance than the all-f32 variant: bf16 MXU-operand
    # rounding (adjacency dots, handoff, LSTM gate matmuls) vs the f32 reference
    np.testing.assert_allclose(np.asarray(z_lstm), np.asarray(ref_lstm),
                               rtol=3e-2, atol=3e-2)
    np.testing.assert_allclose(np.asarray(z_future), np.asarray(ref_future),
                               rtol=3e-2, atol=3e-2)

    assert z_lstm.shape == (T_EFF, N, H) and z_future.shape == (N, H)
    print("KERNEL_OK")
</pallas_src>

<mosaic_0001>
module attributes {stable_mosaic.version = 11 : i64} {
  func.func @_gcn_step_kernel(%arg0: i32, %arg1: memref<1x24x24xbf16, #tpu.memory_space<vmem>>, %arg2: memref<1x24x1xf32, #tpu.memory_space<vmem>>, %arg3: memref<1x24x32xf32, #tpu.memory_space<vmem>>, %arg4: memref<1x32xf32, #tpu.memory_space<vmem>>, %arg5: memref<1x2x32x32xf32, #tpu.memory_space<vmem>>, %arg6: memref<1x1x32xf32, #tpu.memory_space<vmem>>, %arg7: memref<1x1x32xf32, #tpu.memory_space<vmem>>, %arg8: memref<1x24x32xbf16, #tpu.memory_space<vmem>>) attributes {dimension_semantics = [#tpu.dimension_semantics<parallel>], iteration_bounds = array<i64: 7>, scalar_prefetch = 0 : i64, scratch_operands = 0 : i64, tpu.core_type = #tpu.core_type<tc>, window_params = [{transform_indices = @transform_0, window_bounds = array<i64: 1, 24, 24>}, {transform_indices = @transform_1, window_bounds = array<i64: 1, 24, 1>}, {transform_indices = @transform_2, window_bounds = array<i64: 1, 24, 32>}, {pipeline_mode = #tpu.pipeline_mode<synchronous>, transform_indices = @transform_3, window_bounds = array<i64: 1, 32>}, {transform_indices = @transform_4, window_bounds = array<i64: 1, 2, 32, 32>}, {transform_indices = @transform_5, window_bounds = array<i64: 1, 1, 32>}, {transform_indices = @transform_6, window_bounds = array<i64: 1, 1, 32>}, {transform_indices = @transform_7, window_bounds = array<i64: 1, 24, 32>}]} {
    %c0 = arith.constant 0 : index
    %c0_0 = arith.constant 0 : index
    %c0_1 = arith.constant 0 : index
    %0 = vector.load %arg1[%c0, %c0_0, %c0_1] : memref<1x24x24xbf16, #tpu.memory_space<vmem>>, vector<1x24x24xbf16>
    %1 = vector.shape_cast %0 : vector<1x24x24xbf16> to vector<24x24xbf16>
    %c0_2 = arith.constant 0 : index
    %c0_3 = arith.constant 0 : index
    %c0_4 = arith.constant 0 : index
    %2 = vector.load %arg2[%c0_2, %c0_3, %c0_4] : memref<1x24x1xf32, #tpu.memory_space<vmem>>, vector<1x24x1xf32>
    %3 = vector.shape_cast %2 : vector<1x24x1xf32> to vector<24x1xf32>
    %c0_5 = arith.constant 0 : index
    %c0_6 = arith.constant 0 : index
    %c0_7 = arith.constant 0 : index
    %4 = vector.load %arg3[%c0_5, %c0_6, %c0_7] : memref<1x24x32xf32, #tpu.memory_space<vmem>>, vector<1x24x32xf32>
    %5 = vector.shape_cast %4 : vector<1x24x32xf32> to vector<24x32xf32>
    %6 = vector.broadcast %3 : vector<24x1xf32> to vector<24x32xf32>
    %7 = arith.mulf %6, %5 : vector<24x32xf32>
    %8 = arith.truncf %7 : vector<24x32xf32> to vector<24x32xbf16>
    %cst = arith.constant dense<0.000000e+00> : vector<24x32xf32>
    %9 = tpu.matmul %1, %8, %cst {dimension_numbers = #tpu.dot_dimension_numbers<[1], [0], [0], [1], [0, 0, 1, 1], [], []>} : vector<24x24xbf16>, vector<24x32xbf16>, vector<24x32xf32> -> vector<24x32xf32>
    %10 = arith.addf %9, %7 : vector<24x32xf32>
    %11 = vector.broadcast %3 : vector<24x1xf32> to vector<24x32xf32>
    %12 = arith.mulf %11, %10 : vector<24x32xf32>
    %c0_8 = arith.constant 0 : index
    %c0_9 = arith.constant 0 : index
    %13 = vector.load %arg4[%c0_8, %c0_9] : memref<1x32xf32, #tpu.memory_space<vmem>>, vector<1x32xf32>
    %14 = vector.broadcast %13 : vector<1x32xf32> to vector<24x32xf32>
    %15 = arith.addf %12, %14 : vector<24x32xf32>
    %16 = arith.truncf %15 : vector<24x32xf32> to vector<24x32xbf16>
    %cst_10 = arith.constant dense<0.000000e+00> : vector<24x32xf32>
    %17 = tpu.matmul %1, %16, %cst_10 {dimension_numbers = #tpu.dot_dimension_numbers<[1], [0], [0], [1], [0, 0, 1, 1], [], []>} : vector<24x24xbf16>, vector<24x32xbf16>, vector<24x32xf32> -> vector<24x32xf32>
    %cst_11 = arith.constant 0.899999976 : f32
    %18 = vector.broadcast %cst_11 : f32 to vector<24x32xf32>
    %19 = arith.mulf %18, %17 : vector<24x32xf32>
    %cst_12 = arith.constant 1.000000e-01 : f32
    %20 = vector.broadcast %cst_12 : f32 to vector<24x32xf32>
    %21 = arith.mulf %20, %15 : vector<24x32xf32>
    %22 = arith.addf %19, %21 : vector<24x32xf32>
    %cst_13 = arith.constant 0.594534874 : f32
    %23 = vector.broadcast %cst_13 : f32 to vector<24x32xf32>
    %24 = arith.mulf %23, %22 : vector<24x32xf32>
    %c0_14 = arith.constant 0 : index
    %c0_15 = arith.constant 0 : index
    %c0_16 = arith.constant 0 : index
    %c0_17 = arith.constant 0 : index
    %25 = vector.load %arg5[%c0_14, %c0_15, %c0_16, %c0_17] : memref<1x2x32x32xf32, #tpu.memory_space<vmem>>, vector<1x1x32x32xf32>
    %26 = vector.shape_cast %25 : vector<1x1x32x32xf32> to vector<32x32xf32>
    %cst_18 = arith.constant dense<0.000000e+00> : vector<24x32xf32>
    %27 = tpu.matmul %22, %26, %cst_18 {dimension_numbers = #tpu.dot_dimension_numbers<[1], [0], [0], [1], [0, 0, 1, 1], [], []>} : vector<24x32xf32>, vector<32x32xf32>, vector<24x32xf32> -> vector<24x32xf32>
    %cst_19 = arith.constant 0.405465096 : f32
    %28 = vector.broadcast %cst_19 : f32 to vector<24x32xf32>
    %29 = arith.mulf %28, %27 : vector<24x32xf32>
    %30 = arith.addf %24, %29 : vector<24x32xf32>
    %cst_20 = arith.constant dense<0.000000e+00> : vector<32xf32>
    %31 = vector.multi_reduction <add>, %30, %cst_20 [0] : vector<24x32xf32> to vector<32xf32>
    %32 = vector.shape_cast %31 : vector<32xf32> to vector<1x32xf32>
    %cst_21 = arith.constant 0.0416666679 : f32
    %33 = vector.broadcast %cst_21 : f32 to vector<1x32xf32>
    %34 = arith.mulf %32, %33 : vector<1x32xf32>
    %35 = vector.broadcast %34 : vector<1x32xf32> to vector<24x32xf32>
    %36 = arith.subf %30, %35 : vector<24x32xf32>
    %37 = arith.mulf %36, %36 : vector<24x32xf32>
    %cst_22 = arith.constant dense<0.000000e+00> : vector<32xf32>
    %38 = vector.multi_reduction <add>, %37, %cst_22 [0] : vector<24x32xf32> to vector<32xf32>
    %39 = vector.shape_cast %38 : vector<32xf32> to vector<1x32xf32>
    %cst_23 = arith.constant 0.0416666679 : f32
    %40 = vector.broadcast %cst_23 : f32 to vector<1x32xf32>
    %41 = arith.mulf %39, %40 : vector<1x32xf32>
    %c0_24 = arith.constant 0 : index
    %c0_25 = arith.constant 0 : index
    %c0_26 = arith.constant 0 : index
    %42 = vector.load %arg6[%c0_24, %c0_25, %c0_26] : memref<1x1x32xf32, #tpu.memory_space<vmem>>, vector<1x1x32xf32>
    %43 = vector.shape_cast %42 : vector<1x1x32xf32> to vector<1x32xf32>
    %c0_27 = arith.constant 0 : index
    %c0_28 = arith.constant 0 : index
    %c0_29 = arith.constant 0 : index
    %44 = vector.load %arg7[%c0_27, %c0_28, %c0_29] : memref<1x1x32xf32, #tpu.memory_space<vmem>>, vector<1x1x32xf32>
    %45 = vector.shape_cast %44 : vector<1x1x32xf32> to vector<1x32xf32>
    %cst_30 = arith.constant 9.99999974E-6 : f32
    %46 = vector.broadcast %cst_30 : f32 to vector<1x32xf32>
    %47 = arith.addf %41, %46 : vector<1x32xf32>
    %48 = math.rsqrt %47 : vector<1x32xf32>
    %49 = vector.broadcast %48 : vector<1x32xf32> to vector<24x32xf32>
    %50 = arith.mulf %36, %49 : vector<24x32xf32>
    %51 = vector.broadcast %43 : vector<1x32xf32> to vector<24x32xf32>
    %52 = arith.mulf %50, %51 : vector<24x32xf32>
    %53 = vector.broadcast %45 : vector<1x32xf32> to vector<24x32xf32>
    %54 = arith.addf %52, %53 : vector<24x32xf32>
    %cst_31 = arith.constant 0.000000e+00 : f32
    %55 = vector.broadcast %cst_31 : f32 to vector<24x32xf32>
    %56 = arith.maximumf %54, %55 : vector<24x32xf32>
    %57 = arith.truncf %56 : vector<24x32xf32> to vector<24x32xbf16>
    %cst_32 = arith.constant dense<0.000000e+00> : vector<24x32xf32>
    %58 = tpu.matmul %1, %57, %cst_32 {dimension_numbers = #tpu.dot_dimension_numbers<[1], [0], [0], [1], [0, 0, 1, 1], [], []>} : vector<24x24xbf16>, vector<24x32xbf16>, vector<24x32xf32> -> vector<24x32xf32>
    %cst_33 = arith.constant 0.899999976 : f32
    %59 = vector.broadcast %cst_33 : f32 to vector<24x32xf32>
    %60 = arith.mulf %59, %58 : vector<24x32xf32>
    %cst_34 = arith.constant 1.000000e-01 : f32
    %61 = vector.broadcast %cst_34 : f32 to vector<24x32xf32>
    %62 = arith.mulf %61, %15 : vector<24x32xf32>
    %63 = arith.addf %60, %62 : vector<24x32xf32>
    %cst_35 = arith.constant 0.776856422 : f32
    %64 = vector.broadcast %cst_35 : f32 to vector<24x32xf32>
    %65 = arith.mulf %64, %63 : vector<24x32xf32>
    %c0_36 = arith.constant 0 : index
    %c1 = arith.constant 1 : index
    %c0_37 = arith.constant 0 : index
    %c0_38 = arith.constant 0 : index
    %66 = vector.load %arg5[%c0_36, %c1, %c0_37, %c0_38] : memref<1x2x32x32xf32, #tpu.memory_space<vmem>>, vector<1x1x32x32xf32>
    %67 = vector.shape_cast %66 : vector<1x1x32x32xf32> to vector<32x32xf32>
    %cst_39 = arith.constant dense<0.000000e+00> : vector<24x32xf32>
    %68 = tpu.matmul %63, %67, %cst_39 {dimension_numbers = #tpu.dot_dimension_numbers<[1], [0], [0], [1], [0, 0, 1, 1], [], []>} : vector<24x32xf32>, vector<32x32xf32>, vector<24x32xf32> -> vector<24x32xf32>
    %cst_40 = arith.constant 0.223143548 : f32
    %69 = vector.broadcast %cst_40 : f32 to vector<24x32xf32>
    %70 = arith.mulf %69, %68 : vector<24x32xf32>
    %71 = arith.addf %65, %70 : vector<24x32xf32>
    %72 = arith.truncf %71 : vector<24x32xf32> to vector<24x32xbf16>
    %c0_41 = arith.constant 0 : index
    %c0_42 = arith.constant 0 : index
    %c0_43 = arith.constant 0 : index
    %73 = vector.load %arg8[%c0_41, %c0_42, %c0_43] : memref<1x24x32xbf16, #tpu.memory_space<vmem>>, vector<1x24x32xbf16>
    %74 = vector.shape_cast %73 : vector<1x24x32xbf16> to vector<24x32xbf16>
    %75 = vector.shape_cast %72 : vector<24x32xbf16> to vector<1x24x32xbf16>
    tpu.vector_store %arg8[%c0_41, %c0_42, %c0_43], %75 {strides = array<i32>} : memref<1x24x32xbf16, #tpu.memory_space<vmem>>, vector<1x24x32xbf16>,
    return
  }
  func.func @transform_0(%arg0: i32) -> (i32, i32, i32) {
    %c0_i32 = arith.constant 0 : i32
    %c0_i32_0 = arith.constant 0 : i32
    %c0_i32_1 = arith.constant 0 : i32
    return %arg0, %c0_i32, %c0_i32_0 : i32, i32, i32
  }
  func.func @transform_1(%arg0: i32) -> (i32, i32, i32) {
    %c0_i32 = arith.constant 0 : i32
    %c0_i32_0 = arith.constant 0 : i32
    %c0_i32_1 = arith.constant 0 : i32
    return %arg0, %c0_i32, %c0_i32_0 : i32, i32, i32
  }
  func.func @transform_2(%arg0: i32) -> (i32, i32, i32) {
    %c0_i32 = arith.constant 0 : i32
    %c0_i32_0 = arith.constant 0 : i32
    %c0_i32_1 = arith.constant 0 : i32
    return %arg0, %c0_i32, %c0_i32_0 : i32, i32, i32
  }
  func.func @transform_3(%arg0: i32) -> (i32, i32) {
    %c0_i32 = arith.constant 0 : i32
    %c0_i32_0 = arith.constant 0 : i32
    %c0_i32_1 = arith.constant 0 : i32
    return %c0_i32, %c0_i32_0 : i32, i32
  }
  func.func @transform_4(%arg0: i32) -> (i32, i32, i32, i32) {
    %c0_i32 = arith.constant 0 : i32
    %c0_i32_0 = arith.constant 0 : i32
    %c0_i32_1 = arith.constant 0 : i32
    %c0_i32_2 = arith.constant 0 : i32
    return %arg0, %c0_i32, %c0_i32_0, %c0_i32_1 : i32, i32, i32, i32
  }
  func.func @transform_5(%arg0: i32) -> (i32, i32, i32) {
    %c0_i32 = arith.constant 0 : i32
    %c0_i32_0 = arith.constant 0 : i32
    %c0_i32_1 = arith.constant 0 : i32
    return %arg0, %c0_i32, %c0_i32_0 : i32, i32, i32
  }
  func.func @transform_6(%arg0: i32) -> (i32, i32, i32) {
    %c0_i32 = arith.constant 0 : i32
    %c0_i32_0 = arith.constant 0 : i32
    %c0_i32_1 = arith.constant 0 : i32
    return %arg0, %c0_i32, %c0_i32_0 : i32, i32, i32
  }
  func.func @transform_7(%arg0: i32) -> (i32, i32, i32) {
    %c0_i32 = arith.constant 0 : i32
    %c0_i32_0 = arith.constant 0 : i32
    %c0_i32_1 = arith.constant 0 : i32
    return %arg0, %c0_i32, %c0_i32_0 : i32, i32, i32
  }
}

</mosaic_0001>

<bundles_post_ra>
// kernel: tpu_custom_call.1
= control target key start
LH: loop header
LB: loop body
LE: loop exit
PB: predicated region body
PF: predicated region fallthrough
CT: control target
= control target key end

     0   :  { %s1781_s0 = inlined_call_operand.hbm [shape: bf16[7,24,24], index: 0, kind: input, shape index: {}]   ;;  %s1782_s1 = inlined_call_operand.vmem [shape: f32[7,24,1], index: 1, kind: input, shape index: {}]   ;;  %s1783_s2 = inlined_call_operand.vmem [shape: f32[7,24,32], index: 2, kind: input, shape index: {}]   ;;  %s1784_s3 = inlined_call_operand.vmem [shape: f32[1,32], index: 3, kind: input, shape index: {}]   ;;  %s1785_s4 = inlined_call_operand.hbm [shape: f32[7,2,32,32], index: 4, kind: input, shape index: {}]   ;;  %s1786_s5 = inlined_call_operand.vmem [shape: f32[7,1,32], index: 5, kind: input, shape index: {}]   ;;  %s1787_s6 = inlined_call_operand.vmem [shape: f32[7,1,32], index: 6, kind: input, shape index: {}]   ;;  %s1788_s7 = inlined_call_operand.hbm [shape: bf16[7,24,32], index: 7, kind: output, shape index: {}]  }
   0x1   :  { %1791 = sst [smem:[#allocation12_spill]] %s1781_s0 }
   0x2   :  { %12 = vsyncpa [#allocation3], 0 }
   0x3   :  { %14 = vsyncpa [#allocation3 + $0x1], 0 }
   0x4   :  { %15 = vsyncpa [#allocation6], 0 }
   0x5   :  { %17 = vsyncpa [#allocation6 + $0x1], 0 }
   0x6   :  { %18 = vsyncpa [#allocation4], 0 }
   0x7   :  { %20 = vsyncpa [#allocation4 + $0x1], 0  ;;  %s1471_s24 = smov 0   ;;  %s1473_s25 = smov 0  }
   0x8   :  { %s1475_s26 = smov 0   ;;  %s1477_s27 = smov 0  }
   0x9 LB: > { %s1492_s28 = sadd.s32 4294967295, %s1416_s27   ;;  %s1069_s29 = sadd.s32 4294967294, %s1416_s27   ;;  %s1416_s27 = sphi %s1477_s27, %s1806_s27   ;;  %s1412_s26 = sphi %s1475_s26, %s1805_s26   ;;  %s1408_s25 = sphi %s1473_s25, %s1804_s25   ;;  %s1404_s24 = sphi %s1471_s24, %s1803_s24  }
   0xa   : > { %s1496_s30 = sadd.s32 1, %s1416_s27   ;;  %s33_s8 = sadd.s32 1, %s1412_s26 }
   0xb   : > { %s30_s9 = ssub.s32 %s1416_s27, %s1496_s30  ;;  %p40_p0 = scmp.ne.s32.totalorder %s1412_s26, %s1408_s25 }
   0xc   : > { %p31_p1 = scmp.eq.s32.totalorder %s30_s9, 0  ;;  %p41_p2 = scmp.eq.s32.totalorder %s1416_s27, 0 }
   0xd   : > { %p46_p3 = scmp.ne.s32.totalorder %s1408_s25, %s1404_s24  ;;  %p47_p4 = scmp.eq.s32.totalorder %s1492_s28, 0 }
   0xe   : > { %s1508_s10 = scalar_select %p31_p1, %s1412_s26, %s33_s8  }
   0xf   : > { %p42_p5 = por %p41_p2, %p40_p0  ;;  %p1510_p6 = por %p47_p4, %p46_p3 }
  0x10   : > { %1792 = sst [smem:[#allocation11_spill]] %s1508_s10  ;;  %p221_p7 = scmp.eq.s32.totalorder %s1492_s28, 6 }
  0x11   : > { %s1793_s11 = scalar_select %p1510_p6, 1, 0 }
  0x12   : > { %p227_p8 = scmp.eq.s32.totalorder %s1069_s29, 6  ;;  %p1236_p9 = scmp.lt.s32.totalorder %s1416_s27, 7 }
  0x13   : > { %p1516_p10 = por %p221_p7, %p40_p0  ;;  %s1525_s14 = sand.u32 1, %s1412_s26  }
  0x14   : > { %p1520_p11 = por %p227_p8, %p46_p3  ;;  %s1215_s15 = smul.u32 192, %s1416_s27 }
  0x15   : > { %s1794_s12 = scalar_select %p1516_p10, 1, 0 }
  0x16   : > { %s1795_s13 = scalar_select %p1520_p11, 1, 0 }
  0x17   : > { %s1214_s16 = smul.u32 12, %s1525_s14  ;;  %s1796_s0 = sld [smem:[#allocation12_spill]] }
  0x18   : > { %p1534_p12 = pnand %p1236_p9, %p42_p5  ;;  %s251_s23 = scalar_lea.sflag [#allocation3], %s1525_s14 }
  0x19   : > { %s254_s21 = scalar_lea.vmem [#allocation2], %s1214_s16 }
  0x1a   : > { %s261_s22 = sshll.u32 %s254_s21, 4  ;;  %p1288_p0 = pneg %p1534_p12  ;;  %s1538_s22 = int_to_ptr.vmem [resolvable:$true] %s261_s22 }
  0x1d   : > { %s1532_s19 = scalar_lea.hbm %s1796_s0, %s1215_s15  ;;  %s1291_s15 = scalar_lea.hbm %s1796_s0, 1344 }
  0x1e   : > { %s1286_s29 = scalar_lea.hbm %s1532_s19, 192  ;;  %p1292_p3 = scmp.lt.u32.totalorder %s1532_s19, %s1796_s0 }
  0x1f   : > { %p1287_p13 = scmp.ne.s32.totalorder %s1532_s19, %s1286_s29  ;;  %p1293_p4 = scmp.lt.u32.totalorder %s1291_s15, %s1286_s29 }
  0x20   : > { %p1295_p7 = scmp.lt.u32.totalorder %s1286_s29, %s1532_s19 }
  0x21   : > { %p1289_p1 = pnand %p1288_p0, %p1287_p13  ;;  %p1294_p5 = por %p1293_p4, %p1292_p3 }
  0x23   : > { %p1290_p2 = pneg %p1289_p1  ;;  %p1296_p8 = por %p1295_p7, %p1294_p5 }
  0x25   : > { %p1297_p9 = pnand %p1296_p8, %p1290_p2 }
  0x27   : > { %1300 = shalt.err (!%p1297_p9)
}
  0x28   : > { %s1301_s16 = scalar_lea.vmem %s1538_s22, 192  ;;  %s1418_s21 = smov [#allocation2]  }
  0x29   : > { %p1302_p13 = scmp.ne.s32.totalorder %s1538_s22, %s1301_s16  ;;  %s1306_s8 = sshll.u32 %s1418_s21, 4  ;;  %s1307_s8 = int_to_ptr.vmem [resolvable:$false] %s1306_s8 }
  0x2a   : > { %s1308_s9 = scalar_lea.vmem %s1307_s8, 384  ;;  %p1309_p10 = scmp.lt.s32.totalorder %s1538_s22, %s1307_s8 }
  0x2b   : > { %p1304_p1 = pnand %p1302_p13, %p1288_p0  ;;  %p1310_p3 = scmp.lt.s32.totalorder %s1308_s9, %s1301_s16 }
  0x2d   : > { %p1305_p11 = pneg %p1304_p1  ;;  %p1311_p4 = por %p1310_p3, %p1309_p10 }
  0x2f   : > { %p1312_p5 = pnand %p1311_p4, %p1305_p11 }
  0x31   : > { %1315 = shalt.err (!%p1312_p5)
}
  0x32   : > { %s1419_s29 = smov 64   ;;  %s1420_s15 = smov 4  }
  0x33   : > { %1228 = dma.hbm_to_vmem [thread:$0]  (!%p1534_p12), %s1532_s19, 192, %s1538_s22, %s251_s23, %s1419_s29, %s1419_s29, %s1420_s15  }
  0x34   : > { %p1076_p2 = scmp.ge.s32.totalorder %s1416_s27, 1  ;;  %p318_p7 = scmp.lt.s32.totalorder %s1416_s27, 8 }
  0x35   : > { %s1073_s17 = sshll.u32 %s1525_s14, 6  ;;  %s1107_s16 = sshll.u32 %s1416_s27, 10 }
  0x36   : > { %p1571_p10 = pnand %p1076_p2, %p318_p7  ;;  %s291_s21 = scalar_lea.vmem [#allocation5], %s1073_s17 }
  0x37   : > { %s298_s8 = sshll.u32 %s291_s21, 4  ;;  %s1579_s10 = scalar_lea.hbm %s1785_s4, %s1107_s16  ;;  %s1581_s8 = int_to_ptr.vmem [resolvable:$true] %s298_s8 }
  0x38   : > { %s288_s19 = scalar_lea.sflag [#allocation6], %s1525_s14  ;;  %s1316_s22 = scalar_lea.hbm %s1579_s10, 1024 }
  0x39   : > { %p1317_p11 = scmp.ne.s32.totalorder %s1579_s10, %s1316_s22  ;;  %s1321_s15 = scalar_lea.hbm %s1785_s4, 7168 }
  0x3a   : > { %p1322_p13 = scmp.lt.u32.totalorder %s1579_s10, %s1785_s4  ;;  %p1323_p1 = scmp.lt.u32.totalorder %s1321_s15, %s1316_s22 }
  0x3b   : > { %p1319_p8 = pnand %p1317_p11, %p1288_p0  ;;  %p1325_p4 = scmp.lt.u32.totalorder %s1316_s22, %s1579_s10 }
  0x3c   : > { %p1324_p3 = por %p1323_p1, %p1322_p13 }
  0x3d   : > { %p1320_p9 = pneg %p1319_p8 }
  0x3e   : > { %p1326_p5 = por %p1325_p4, %p1324_p3 }
  0x40   : > { %p1327_p2 = pnand %p1326_p5, %p1320_p9 }
  0x42   : > { %1330 = shalt.err (!%p1327_p2)
}
  0x43   : > { %s1331_s16 = scalar_lea.vmem %s1581_s8, 1024  ;;  %s1421_s21 = smov [#allocation5]  }
  0x44   : > { %p1332_p7 = scmp.ne.s32.totalorder %s1581_s8, %s1331_s16  ;;  %s1336_s9 = sshll.u32 %s1421_s21, 4  ;;  %s1337_s9 = int_to_ptr.vmem [resolvable:$false] %s1336_s9 }
  0x45   : > { %s1338_s23 = scalar_lea.vmem %s1337_s9, 2048  ;;  %p1339_p6 = scmp.lt.s32.totalorder %s1581_s8, %s1337_s9 }
  0x46   : > { %p1334_p11 = pnand %p1332_p7, %p1288_p0  ;;  %p1340_p13 = scmp.lt.s32.totalorder %s1338_s23, %s1331_s16 }
  0x48   : > { %p1335_p8 = pneg %p1334_p11  ;;  %p1341_p1 = por %p1340_p13, %p1339_p6 }
  0x4a   : > { %p1342_p3 = pnand %p1341_p1, %p1335_p8 }
  0x4c   : > { %1345 = shalt.err (!%p1342_p3)
}
  0x4d   : > { %s1422_s22 = smov 128   ;;  %s1423_s29 = smov 8  }
  0x4e   : > { %1231 = dma.hbm_to_vmem [thread:$0]  (!%p1534_p12), %s1579_s10, 1024, %s1581_s8, %s288_s19, %s1422_s22, %s1422_s22, %s1423_s29  }
  0x4f   : > { %322 = sbr.rel (%p1571_p10) target bundleno = 1441 (0x5a1), region = 48  ;;  %s1612_s15 = sand.u32 (!%p1571_p10), 1, %s1408_s25  }
  0x50   : > { %s1216_s0 = smul.u32 (!%p1571_p10), 12, %s1612_s15  ;;  %s325_s17 = scalar_lea.sflag (!%p1571_p10), [#allocation3], %s1612_s15 }
  0x51   : > { %p1799_p6 = scmp.ne.s32.totalorder (!%p1571_p10), %s1793_s11, 0 }
  0x52   : > { %s1618_s16 = scalar_lea.vmem (!%p1571_p10), [#allocation2], %s1216_s0 }
  0x56   : > { %1391 = dma.done.wait (%p1799_p6), %s325_s17, 192  }
  0x57   : > { %1393 = vsyncadd (%p1799_p6), %s325_s17, 4294967104  ;;  %s1077_s10 = sshll.u32 %s1612_s15, 6  ;;  %s334_s14 = scalar_lea.sflag [#allocation6], %s1612_s15 }
  0x58   : > { %s1626_s20 = scalar_lea.vmem [#allocation5], %s1077_s10 }
  0x59   : > { %1395 = dma.done.wait (%p1799_p6), %s334_s14, 1024  }
  0x5a   : > { %1397 = vsyncadd (%p1799_p6), %s334_s14, 4294966272  ;;  %p389_p12 = scmp.lt.s32.totalorder %s1492_s28, 6  ;;  %v1424_v0 = vmov 0   ;;  %v1282_v4 = vld [vmem:[%s1618_s16] sm:$0xff]   ;;  %vm443_vm0 = vcmask 195584   ;;  %vm450_vm1 = vcmask 1043456  }
  0x5b   : > { %1280 = vset.pattern.permute.xlu0 %v1424_v0  ;;  %1281 = vset.pattern.permute.xlu1 %v1424_v0  ;;  %v1649_v17 = vld [vmem:[%s1618_s16 + $0x8] ss:$0 sps:$4 sm:$0xff]   ;;  %v580_v18 = vld [vmem:[%s1626_s20] sm:$0xff]  ;;  %v581_v19 = vld [vmem:[%s1626_s20 + $0x8] sm:$0xff]  ;;  %v1425_v20 = vmov 0.0|0.0   ;;  %vm1426_vm2 = vmmov 0  }
  0x5c   : > { %s1634_s18 = scalar_select %p389_p12, %s1492_s28, 6  ;;  %1141 = vmatprep.mubr.msk.bf16.mxu0 %vm443_vm0, %v1282_v4  ;;  %1149 = vmatprep.mubr.msk.bf16.mxu1 %vm443_vm0, %v1282_v4  ;;  %v1196_v21 = vpack.c.bf16 %v581_v19, %v580_v18  ;;  %v1084_v31 = vld [vmem:[%s1784_s3] ss:$0 sm:$0xff]  ;;  %v582_v39 = vld [vmem:[%s1626_s20 + $0x10] sm:$0xff]  ;;  %v583_v40 = vld [vmem:[%s1626_s20 + $0x18] sm:$0xff]  ;;  %v1427_v42 = vmov 0.0  }
  0x5d   : > { %v1199_v41 = vpack.c.bf16 %v583_v40, %v582_v39  ;;  %vm584_vm3 = vcmask 261120   ;;  %v1094_v56 = vld [vmem:[%s1626_s20 + $0x20] sm:$0xff]  ;;  %v1095_v57 = vld [vmem:[%s1626_s20 + $0x28] sm:$0xff]  ;;  %vm913_vm4 = vcmask 257024   ;;  %p1800_p10 = scmp.ne.s32.totalorder %s1794_s12, 0  ;;  %s1428_s29 = smov [#allocation7]  }
  0x5e   : > { %s1217_s8 = smul.u32 24, %s1634_s18  ;;  %v1690_v58 = vpack.c.bf16 %v1095_v57, %v1094_v56  ;;  %s401_s14 = scalar_lea.vmem %s1786_s5, %s1634_s18 }
  0x5f   : > { %s404_s21 = scalar_lea.vmem %s1787_s6, %s1634_s18  ;;  %s1350_s17 = sshll.u32 %s1428_s29, 4  ;;  %s1351_s17 = int_to_ptr.vmem [resolvable:$false] %s1350_s17 }
  0x60   : > { %s393_s9 = scalar_lea.vmem %s1782_s1, %s1217_s8  ;;  %s398_s22 = scalar_lea.vmem %s1783_s2, %s1217_s8 }
  0x61   : > { %v409_v1 = vld [vmem:[%s393_s9] sm:$0xff]  ;;  %v411_v2 = vld [vmem:[%s393_s9 + $0x10] sm:$0xff]  ;;  %v410_v3 = vld [vmem:[%s393_s9 + $0x8] sm:$0xff]  ;;  %s1218_s9 = smul.u32 192, %s1492_s28  ;;  %s918_s28 = scalar_lea.sflag [#allocation4], %s1612_s15 }
  0x62   : > { %417 = vperm.xlu0 %1280, %v409_v1   ;;  %427 = vperm.xlu1 %1281, %v411_v2   ;;  %v414_v6 = vld [vmem:[%s398_s22 + $0x10] sm:$0xff]  ;;  %v412_v8 = vld [vmem:[%s398_s22] sm:$0xff]  ;;  %v413_v9 = vld [vmem:[%s398_s22 + $0x8] sm:$0xff]  ;;  %s1352_s16 = scalar_lea.vmem %s1351_s17, 384 }
  0x63   : > { %s1737_s23 = scalar_lea.hbm %s1788_s7, %s1218_s9 }
  0x66   : > { %422 = vperm.xlu0 %1280, %v410_v3  }
  0xe1   : > { %v418_v5 = vpop.permute.xlu0 %417  ;;  %v428_v7 = vpop.permute.xlu1 %427 }
  0xe2   : > { %v432_v10 = vmul.f32 %v428_v7, %v414_v6  ;;  %v430_v12 = vmul.f32 %v418_v5, %v412_v8 }
  0xe4   : > { %v434_v14 = vpack.c.bf16 %v432_v10, %v432_v10 }
  0xe5   : > { %v423_v11 = vpop.permute.xlu0 %422 }
  0xe6   : > { %v431_v13 = vmul.f32 %v423_v11, %v413_v9  ;;  %v452_v16 = vsel %vm450_vm1, %v434_v14, 0 }
  0xe8   : > { %v433_v15 = vpack.c.bf16 %v431_v13, %v430_v12 }
  0xea   : > { %1137 = vmatprep.subr.bf16.mxu0 %v433_v15 }
  0xeb   : > { %1138 = vmatpush3.bf16.msra.mxu0 %v433_v15 }
  0xec   : > { %1211 = vmatprep.subr.msk.bf16.mxu0 %vm450_vm1, %v434_v14 }
  0xef   : > { %1140 = vmatpush3.bf16.msra.mxu0 %v452_v16 }
  0xf0   : > { %1195 = vmatprep.subr.bf16.mxu0 %v1425_v20 }
  0xf2   : > { %1142 = vmatmul.mubr.msk.bf16.vlgmr.msra.gmra.mrb[0].mxu0 %vm443_vm0, %v1649_v17 }
  0xf3   : > { %1197 = vmatpush3.bf16.msra.mxu0 %v1196_v21  ;;  %1161 = vmatprep.mubr.msk.f32.mxu0 %vm1426_vm2, %v1427_v42 }
  0xf4   : > { %1198 = vmatprep.subr.bf16.mxu0 %v1425_v20 }
  0xf7   : > { %1200 = vmatpush3.bf16.msra.mxu0 %v1199_v41 }
  0xf8   : > { %1201 = vmatprep.subr.bf16.mxu0 %v1425_v20 }
 0x1c5   : > { %v1143_v22 = vpop.f32.mrb[0].mxu0 }
 0x1c6   : > { %v497_v23 = vadd.f32 %v1143_v22, %v432_v10  ;;  %v488_v24 = vpop.f32.mrb[1].mxu0 }
 0x1c7   : > { %v489_v25 = vadd.f32 %v488_v24, %v430_v12  ;;  %v1144_v26 = vpop.f32.mrb[2].mxu0 }
 0x1c8   : > { %v491_v27 = vpop.f32.mrb[3].mxu0  ;;  %v504_v28 = vmul.f32 %v497_v23, %v428_v7 }
 0x1c9   : > { %v502_v29 = vmul.f32 %v489_v25, %v418_v5  ;;  %v492_v30 = vadd.f32 %v491_v27, %v431_v13 }
 0x1ca   : > { %v514_v33 = vadd.f32 %v1084_v31, %v504_v28 }
 0x1cb   : > { %v503_v32 = vmul.f32 %v492_v30, %v423_v11  ;;  %v512_v34 = vadd.f32 %v1084_v31, %v502_v29 }
 0x1cc   : > { %v516_v37 = vpack.c.bf16 %v514_v33, %v514_v33  ;;  %v1679_v54 = vmul.f32 0.1, %v514_v33 }
 0x1cd   : > { %v513_v35 = vadd.f32 %v1084_v31, %v503_v32  ;;  %v1670_v46 = vmul.f32 0.1, %v512_v34 }
 0x1ce   : > { %v518_v38 = vsel %vm450_vm1, %v516_v37, 0 }
 0x1cf   : > { %v515_v36 = vpack.c.bf16 %v513_v35, %v512_v34  ;;  %v1673_v51 = vmul.f32 0.1, %v513_v35 }
 0x1d1   : > { %1145 = vmatprep.subr.bf16.mxu1 %v515_v36 }
 0x1d2   : > { %1146 = vmatpush3.bf16.msra.mxu1 %v515_v36 }
 0x1d3   : > { %1212 = vmatprep.subr.msk.bf16.mxu1 %vm450_vm1, %v516_v37 }
 0x1d6   : > { %1148 = vmatpush3.bf16.msra.mxu1 %v518_v38 }
 0x1d9   : > { %1150 = vmatmul.mubr.msk.bf16.vlgmr.msra.gmra.mrb[0].mxu1 %vm443_vm0, %v1649_v17 }
 0x1da   : > { %1174 = vmatprep.mubr.msk.bf16.mxu1 %vm443_vm0, %v1282_v4 }
 0x2ac   : > { %v1151_v43 = vpop.f32.mrb[0].mxu1 }
 0x2ad   : > { %v554_v44 = vpop.f32.mrb[1].mxu1  ;;  %v570_v52 = vmul.f32 0.9, %v1151_v43 }
 0x2ae   : > { %v568_v45 = vmul.f32 0.9, %v554_v44  ;;  %v1152_v47 = vpop.f32.mrb[2].mxu1 }
 0x2af   : > { %v557_v48 = vpop.f32.mrb[3].mxu1  ;;  %v576_v55 = vadd.f32 %v1679_v54, %v570_v52 }
 0x2b0   : > { %v574_v49 = vadd.f32 %v1670_v46, %v568_v45  ;;  %v569_v50 = vmul.f32 0.9, %v557_v48  ;;  %v1090_v45 = vld [vmem:[%s401_s14] ss:$0 sm:$0xff] }
 0x2b1   : > { %v579_v5 = vmul.f32 0.5945349, %v576_v55 }
 0x2b2   : > { %1162 = vmatmul.mubr.msk.f32.vlgmr.msra.gmra.mrb[4].mxu0 %vm584_vm3, %v574_v49  ;;  %v575_v53 = vadd.f32 %v1673_v51, %v569_v50  ;;  %v577_v60 = vmul.f32 0.5945349, %v574_v49  ;;  %v1091_v50 = vld [vmem:[%s404_s21] ss:$0 sm:$0xff] }
 0x2b3   : > { %1164 = vmatprep.mubr.msk.f32.mxu0 %vm1426_vm2, %v1427_v42  ;;  %1203 = vmatpush3.bf16.msra.mxu0 %v1690_v58 }
 0x2b4   : > { %1204 = vmatprep.subr.bf16.mxu0 %v1425_v20  ;;  %v578_v1 = vmul.f32 0.5945349, %v575_v53 }
 0x2b6   : > { %1165 = vmatmul.mubr.msk.f32.gmra.mrb[6].mxu0 %vm584_vm3, %v575_v53 }
 0x2b7   : > { %1167 = vmatprep.mubr.msk.f32.mxu0 %vm1426_vm2, %v1427_v42 }
 0x2ba   : > { %1168 = vmatmul.mubr.msk.f32.gmra.mrb[8].mxu0 %vm584_vm3, %v576_v55 }
 0x2bb   : > { %1186 = vmatprep.mubr.msk.f32.mxu0 %vm1426_vm2, %v1427_v42 }
 0x385   : > { %v660_v59 = vpop.f32.mrb[4].mxu0 }
 0x386   : > { %v674_v61 = vmul.f32 0.4054651, %v660_v59  ;;  %v1163_v62 = vpop.f32.mrb[5].mxu0 }
 0x388   : > { %v677_v63 = vadd.f32 %v674_v61, %v577_v60 }
 0x389   : > { %v665_v0 = vpop.f32.mrb[6].mxu0 }
 0x38a   : > { %v675_v2 = vmul.f32 0.4054651, %v665_v0  ;;  %v1166_v3 = vpop.f32.mrb[7].mxu0  ;;  %v680_v7 = vsel %vm584_vm3, %v677_v63, 0.0 }
 0x38b   : > { %v1097_v3 = vld [vmem:[%s1626_s20 + $0x38] sm:$0xff] }
 0x38c   : > { %v678_v4 = vadd.f32 %v675_v2, %v578_v1  ;;  %v1096_v2 = vld [vmem:[%s1626_s20 + $0x30] sm:$0xff]  ;;  %s388_s20 = scalar_lea.vmem [#allocation7], %s1216_s0 }
 0x38d   : > { %v670_v6 = vpop.f32.mrb[8].mxu0  ;;  %s931_s18 = sshll.u32 %s388_s20, 4  ;;  %s1731_s18 = int_to_ptr.vmem [resolvable:$true] %s931_s18 }
 0x38e   : > { %v681_v8 = vsel %vm584_vm3, %v678_v4, 0.0  ;;  %v676_v9 = vmul.f32 0.4054651, %v670_v6  ;;  %v1169_v10 = vpop.f32.mrb[9].mxu0  ;;  %s1346_s22 = scalar_lea.vmem %s1731_s18, 192  ;;  %p1353_p5 = scmp.lt.s32.totalorder %s1731_s18, %s1351_s17 }
 0x38f   : > { %v682_v11 = vadd.f32 %v681_v8, %v680_v7  ;;  %p1347_p0 = scmp.ne.s32.totalorder %s1731_s18, %s1346_s22  ;;  %p1354_p2 = scmp.lt.s32.totalorder %s1352_s16, %s1346_s22 }
 0x390   : > { %v679_v12 = vadd.f32 %v676_v9, %v579_v5 }
 0x391   : > { %p1348_p9 = pnand %p1347_p0, %p1800_p10  ;;  %p1355_p7 = por %p1354_p2, %p1353_p5 }
 0x392   : > { %v683_v13 = vsel %vm584_vm3, %v679_v12, 0.0 }
 0x393   : > { %v684_v14 = vadd.f32 %v683_v13, %v682_v11  ;;  %p1349_p4 = pneg %p1348_p9 }
 0x395   : > { %v685_v15 = vrot.slane %v684_v14, 4  ;;  %p1356_p11 = pnand %p1355_p7, %p1349_p4 }
 0x397   : > { %v686_v16 = vadd.f32 %v685_v15, %v684_v14 }
 0x399   : > { %v687_v18 = vrot.slane %v686_v16, 2 }
 0x39b   : > { %v688_v19 = vadd.f32 %v687_v18, %v686_v16 }
 0x39d   : > { %v689_v21 = vrot.slane %v688_v19, 1 }
 0x39f   : > { %v690_v22 = vadd.f32 %v689_v21, %v688_v19 }
 0x3a1   : > { %v691_v23 = vmul.f32 0.041666668, %v690_v22 }
 0x3a3   : > { %v692_v24 = vsub.f32 %v677_v63, %v691_v23  ;;  %v693_v25 = vsub.f32 %v678_v4, %v691_v23  ;;  %v694_v26 = vsub.f32 %v679_v12, %v691_v23  ;;  %v1205_v4 = vpack.c.bf16 %v1097_v3, %v1096_v2 }
 0x3a5   : > { %v695_v27 = vmul.f32 %v692_v24, %v692_v24  ;;  %v696_v28 = vmul.f32 %v693_v25, %v693_v25  ;;  %v697_v29 = vmul.f32 %v694_v26, %v694_v26  ;;  %1206 = vmatpush3.bf16.msra.mxu0 %v1205_v4 }
 0x3a7   : > { %v698_v30 = vsel %vm584_vm3, %v695_v27, 0.0  ;;  %v699_v31 = vsel %vm584_vm3, %v696_v28, 0.0  ;;  %v701_v33 = vsel %vm584_vm3, %v697_v29, 0.0 }
 0x3a8   : > { %v700_v32 = vadd.f32 %v699_v31, %v698_v30 }
 0x3aa   : > { %v702_v34 = vadd.f32 %v701_v33, %v700_v32 }
 0x3ac   : > { %v703_v35 = vrot.slane %v702_v34, 4 }
 0x3ae   : > { %v704_v36 = vadd.f32 %v703_v35, %v702_v34 }
 0x3b0   : > { %v705_v37 = vrot.slane %v704_v36, 2 }
 0x3b2   : > { %v706_v38 = vadd.f32 %v705_v37, %v704_v36 }
 0x3b4   : > { %v707_v39 = vrot.slane %v706_v38, 1 }
 0x3b6   : > { %v708_v40 = vadd.f32 %v707_v39, %v706_v38 }
 0x3b8   : > { %v709_v41 = vmul.f32 0.041666668, %v708_v40 }
 0x3ba   : > { %v712_v43 = vadd.f32 1e-05, %v709_v41 }
 0x3bc   : > { %1284 = vrsqrt.f32 %v712_v43 }
 0x3c6   : > { %v1285_v44 = vpop.eup %1284 }
 0x3c7   : > { %v716_v47 = vmul.f32 %v1285_v44, %v694_v26  ;;  %v714_v48 = vmul.f32 %v1285_v44, %v692_v24  ;;  %v715_v49 = vmul.f32 %v1285_v44, %v693_v25 }
 0x3c9   : > { %v725_v52 = vmul.f32 %v1090_v45, %v716_v47  ;;  %v723_v53 = vmul.f32 %v1090_v45, %v714_v48  ;;  %v724_v55 = vmul.f32 %v1090_v45, %v715_v49 }
 0x3cb   : > { %v732_v56 = vadd.f32 %v1091_v50, %v723_v53  ;;  %v733_v57 = vadd.f32 %v1091_v50, %v724_v55  ;;  %v734_v59 = vadd.f32 %v1091_v50, %v725_v52 }
 0x3cd   : > { %v735_v60 = vmax.f32 %v732_v56, 0.0  ;;  %v736_v61 = vmax.f32 %v733_v57, 0.0  ;;  %v737_v62 = vmax.f32 %v734_v59, 0.0 }
 0x3cf   : > { %v738_v63 = vpack.c.bf16 %v736_v61, %v735_v60  ;;  %v739_v0 = vpack.c.bf16 %v737_v62, %v737_v62 }
 0x3d1   : > { %1170 = vmatprep.subr.bf16.mxu1 %v738_v63  ;;  %v741_v1 = vsel %vm450_vm1, %v739_v0, 0 }
 0x3d2   : > { %1171 = vmatpush3.bf16.msra.mxu1 %v738_v63 }
 0x3d3   : > { %1213 = vmatprep.subr.msk.bf16.mxu1 %vm450_vm1, %v739_v0 }
 0x3d6   : > { %1173 = vmatpush3.bf16.msra.mxu1 %v741_v1 }
 0x3d7   : > { %1207 = vmatprep.subr.bf16.mxu1 %v1425_v20 }
 0x3d9   : > { %1175 = vmatmul.mubr.msk.bf16.vlgmr.msra.gmra.mrb[4].mxu1 %vm443_vm0, %v1649_v17 }
 0x3da   : > { %1209 = vmatpush3.bf16.msra.mxu1 %v1690_v58  ;;  %1189 = vmatprep.mubr.msk.f32.mxu1 %vm1426_vm2, %v1427_v42 }
 0x3db   : > { %1208 = vmatprep.subr.bf16.mxu1 %v1425_v20 }
 0x3de   : > { %1210 = vmatpush3.bf16.msra.mxu1 %v1205_v4 }
 0x4ac   : > { %v1176_v5 = vpop.f32.mrb[4].mxu1 }
 0x4ad   : > { %v777_v6 = vpop.f32.mrb[5].mxu1  ;;  %v793_v11 = vmul.f32 0.9, %v1176_v5 }
 0x4ae   : > { %v791_v7 = vmul.f32 0.9, %v777_v6  ;;  %v1177_v8 = vpop.f32.mrb[6].mxu1 }
 0x4af   : > { %v780_v9 = vpop.f32.mrb[7].mxu1  ;;  %v796_v20 = vadd.f32 %v793_v11, %v1679_v54 }
 0x4b0   : > { %v794_v10 = vadd.f32 %v791_v7, %v1670_v46  ;;  %v792_v17 = vmul.f32 0.9, %v780_v9 }
 0x4b1   : > { %v799_v23 = vmul.f32 0.7768564, %v796_v20 }
 0x4b2   : > { %v795_v58 = vadd.f32 %v792_v17, %v1673_v51  ;;  %1187 = vmatmul.mubr.msk.f32.vlgmr.msra.gmra.mrb[10].mxu0 %vm584_vm3, %v794_v10  ;;  %v797_v13 = vmul.f32 0.7768564, %v794_v10 }
 0x4b4   : > { %1190 = vmatmul.mubr.msk.f32.vlgmr.msra.gmra.mrb[8].mxu1 %vm584_vm3, %v795_v58  ;;  %v798_v51 = vmul.f32 0.7768564, %v795_v58 }
 0x4b5   : > { %1192 = vmatprep.mubr.msk.f32.mxu1 %vm1426_vm2, %v1427_v42 }
 0x4b8   : > { %1193 = vmatmul.mubr.msk.f32.gmra.mrb[10].mxu1 %vm584_vm3, %v796_v20 }
 0x585   : > { %v880_v12 = vpop.f32.mrb[10].mxu0 }
 0x586   : > { %v894_v46 = vmul.f32 0.22314355, %v880_v12  ;;  %v1188_v14 = vpop.f32.mrb[11].mxu0 }
 0x587   : > { %v885_v15 = vpop.f32.mrb[8].mxu1 }
 0x588   : > { %v897_v16 = vadd.f32 %v894_v46, %v797_v13  ;;  %v895_v18 = vmul.f32 0.22314355, %v885_v15  ;;  %v1191_v19 = vpop.f32.mrb[9].mxu1 }
 0x58a   : > { %v1108_v21 = vpack.c.bf16 %v897_v16, %v897_v16  ;;  %v898_v22 = vadd.f32 %v895_v18, %v798_v51 }
 0x58b   : > { %v890_v42 = vpop.f32.mrb[10].mxu1 }
 0x58c   : > { %914 = vst.msk [vmem:[%s388_s20] sm:$0xf] %vm913_vm4, %v1108_v21  ;;  %v1109_v54 = vpack.c.bf16 %v898_v22, %v898_v22  ;;  %v896_v24 = vmul.f32 0.22314355, %v890_v42  ;;  %v1194_v25 = vpop.f32.mrb[11].mxu1 }
 0x58e   : > { %915 = vst.msk [vmem:[%s388_s20 + $0x4] sm:$0xf] %vm913_vm4, %v1109_v54  ;;  %v899_v26 = vadd.f32 %v896_v24, %v799_v23 }
 0x590   : > { %v1110_v27 = vpack.c.bf16 %v899_v26, %v899_v26 }
 0x592   : > { %916 = vst.msk [vmem:[%s388_s20 + $0x8] sm:$0xf] %vm913_vm4, %v1110_v27 }
 0x593   : > { %1359 = shalt.err (!%p1356_p11)
}
 0x594   : > { %s1360_s10 = scalar_lea.hbm %s1737_s23, 192  ;;  %s1364_s19 = scalar_lea.hbm %s1788_s7, 1344 }
 0x595   : > { %p1361_p8 = scmp.ne.s32.totalorder %s1737_s23, %s1360_s10  ;;  %p1365_p3 = scmp.lt.u32.totalorder %s1737_s23, %s1788_s7 }
 0x596   : > { %p1366_p6 = scmp.lt.u32.totalorder %s1364_s19, %s1360_s10  ;;  %p1368_p0 = scmp.lt.u32.totalorder %s1360_s10, %s1737_s23 }
 0x597   : > { %p1362_p13 = pnand %p1361_p8, %p1800_p10 }
 0x598   : > { %p1367_p12 = por %p1366_p6, %p1365_p3 }
 0x599   : > { %p1363_p1 = pneg %p1362_p13 }
 0x59a   : > { %p1369_p9 = por %p1368_p0, %p1367_p12 }
 0x59c   : > { %p1370_p4 = pnand %p1369_p9, %p1363_p1 }
 0x59e   : > { %1373 = shalt.err (!%p1370_p4)
}
 0x59f   : > { %s1429_s9 = smov 64   ;;  %s1430_s11 = smov 4  }
 0x5a0   : > { %1223 = dma.vmem_to_hbm [thread:$0]  (%p1800_p10), %s1731_s18, 192, %s1737_s23, %s918_s28, %s1429_s9, %s1429_s9, %s1430_s11  }
 0x5a1 PF: > { %p1237_p5 = scmp.ge.s32.totalorder %s1416_s27, 2  ;;  %s946_s0 = sand.u32 1, %s1404_s24  }
 0x5a2   : > { %p1801_p2 = scmp.ne.s32.totalorder %s1795_s13, 0  ;;  %s947_s22 = scalar_lea.sflag [#allocation4], %s946_s0 }
 0x5a4   : > { %p1233_p7 = pnand %p1237_p5, %p1801_p2 }
 0x5a6   : > { %1399 = dma.done.wait (!%p1233_p7), %s947_s22, 192  }
 0x5a7   : > { %1401 = vsyncadd (!%p1233_p7), %s947_s22, 4294967104  ;;  %s1802_s29 = sld [smem:[#allocation11_spill]]  ;;  %p23_p11 = scmp.ge.s32.totalorder %s1496_s30, 9  }
 0x5a8   : > { %s1803_s24 = smov %s1408_s25  ;;  %s1804_s25 = smov %s1412_s26 }
 0x5a9   : > { %s1806_s27 = smov %s1496_s30  ;;  %25 = sbr.rel (!%p23_p11) target bundleno = 9 (0x9), region = 119 }
 0x5ad   : > { %s1805_s26 = smov %s1802_s29 }
 0x5b0   :  { %952 = vsyncpa [#allocation3], 1 }
 0x5b1   :  { %954 = vsyncpa [#allocation3 + $0x1], 1 }
 0x5b2   :  { %955 = vsyncpa [#allocation6], 1 }
 0x5b3   :  { %957 = vsyncpa [#allocation6 + $0x1], 1 }
 0x5b4   :  { %958 = vsyncpa [#allocation4], 1 }
 0x5b5   :  { %960 = vsyncpa [#allocation4 + $0x1], 1 }

</bundles_post_ra>
